<compile_context>
chip_gen: v7x
topology: tpu7x:2x2x1
jax: 0.10.0
libtpu: 0.0.40
codegen_flags: <defaults>
</compile_context>

<pallas_src>
import jax
import jax.numpy as jnp
from jax.experimental import pallas as pl
from jax.experimental.pallas import tpu as pltpu

_SQRT_2_OVER_PI = 0.7978845608028654  # sqrt(2 / pi)
_LANE = 128
_SUBLANE = 8


def _gelu_kernel(x_ref, o_ref):
    # 0.5*x*(1+tanh(z)) == x*sigmoid(2z); the logistic lowers to the EUP,
    # leaving only a handful of VPU mul/adds. Compute in f32 for fidelity to
    # the PyTorch reference.
    x = x_ref[...].astype(jnp.float32)
    z = (2.0 * _SQRT_2_OVER_PI) * (x + 0.044715 * (x * x * x))
    o_ref[...] = (x * jax.nn.sigmoid(z)).astype(o_ref.dtype)


def gelu(x, *, max_row_tile=8192):
    """Elementwise tanh-GELU via Pallas. Works for any input shape."""
    orig_shape = x.shape
    orig_dtype = x.dtype
    total = x.size
    if total == 0:
        return x

    # Lane-dense layout: (rows, 128), rows a multiple of 8. Only pad (and
    # slice on the way out) when required — jnp.pad / the slice each cost a
    # full HBM copy, which nearly doubles traffic on a BW-bound op.
    pad_unit = _SUBLANE * _LANE
    padded_total = -(-total // pad_unit) * pad_unit
    rows = padded_total // _LANE

    x_flat = x.reshape(-1)
    if padded_total != total:
        x_flat = jnp.pad(x_flat, (0, padded_total - total))
    x2d = x_flat.reshape(rows, _LANE)

    # Row tiling: as big as allowed (multi-MiB blocks amortize the ~600-cycle
    # per-step overhead), but clamp so the grid has at least 2 steps whenever
    # possible (keeps both TensorCores busy on v7x).
    max_row_tile = max(_SUBLANE, (max_row_tile // _SUBLANE) * _SUBLANE)
    row_tile = min(max_row_tile, rows)
    if rows >= 2 * _SUBLANE:
        half_rows = -(-((rows + 1) // 2) // _SUBLANE) * _SUBLANE
        row_tile = min(row_tile, half_rows)
    grid = pl.cdiv(rows, row_tile)

    # Scoped-VMEM budget: 2x double-buffered input + output blocks plus
    # headroom. Raise past v5e's 16 MiB default, cap below v7x's 64 MiB
    # physical VMEM per TensorCore.
    block_bytes = row_tile * _LANE * jnp.dtype(orig_dtype).itemsize
    vmem_limit = min(max(4 * block_bytes + (8 << 20), 32 << 20), 48 << 20)

    out2d = pl.pallas_call(
        _gelu_kernel,
        out_shape=jax.ShapeDtypeStruct((rows, _LANE), orig_dtype),
        grid_spec=pltpu.PrefetchScalarGridSpec(
            num_scalar_prefetch=0,
            grid=(grid,),
            in_specs=[pl.BlockSpec((row_tile, _LANE), lambda i: (i, 0))],
            out_specs=pl.BlockSpec((row_tile, _LANE), lambda i: (i, 0)),
        ),
        compiler_params=pltpu.CompilerParams(
            dimension_semantics=("parallel",),
            vmem_limit_bytes=vmem_limit,
        ),
    )(x2d)

    out_flat = out2d.reshape(-1)
    if padded_total != total:
        out_flat = out_flat[:total]
    return out_flat.reshape(orig_shape)


def _reference(x):
    return 0.5 * x * (1.0 + jnp.tanh(_SQRT_2_OVER_PI * (x + 0.044715 * jnp.power(x, 3))))


if __name__ == "__main__":
    key = jax.random.PRNGKey(0)

    # Small ViT-MLP-like activation: batch=2, seq=8, hidden=32 (hits padding path).
    B, S, D = 2, 8, 32
    x = jax.random.normal(key, (B, S, D), dtype=jnp.float32)
    out = jax.block_until_ready(gelu(x))
    ref = _reference(x)
    assert out.shape == x.shape and out.dtype == x.dtype
    assert jnp.allclose(out, ref, atol=1e-5, rtol=1e-5), "mismatch vs reference (padded path)"

    # Second small case that exercises a multi-step grid + ragged last block.
    key2 = jax.random.PRNGKey(1)
    x2 = jax.random.normal(key2, (5, 40, 128), dtype=jnp.float32)
    out2 = jax.block_until_ready(gelu(x2))
    ref2 = _reference(x2)
    assert jnp.allclose(out2, ref2, atol=1e-5, rtol=1e-5), "mismatch vs reference (ragged path)"

    print("KERNEL_OK")
</pallas_src>

<mosaic_0001>
module attributes {stable_mosaic.version = 11 : i64} {
  func.func @_gelu_kernel(%arg0: i32, %arg1: memref<8x128xf32, #tpu.memory_space<vmem>>, %arg2: memref<8x128xf32, #tpu.memory_space<vmem>>) attributes {dimension_semantics = [#tpu.dimension_semantics<parallel>], iteration_bounds = array<i64: 1>, scalar_prefetch = 0 : i64, scratch_operands = 0 : i64, tpu.core_type = #tpu.core_type<tc>, window_params = [{transform_indices = @transform_0, window_bounds = array<i64: 8, 128>}, {transform_indices = @transform_1, window_bounds = array<i64: 8, 128>}]} {
    %c0 = arith.constant 0 : index
    %c0_0 = arith.constant 0 : index
    %0 = vector.load %arg1[%c0, %c0_0] : memref<8x128xf32, #tpu.memory_space<vmem>>, vector<8x128xf32>
    %1 = arith.mulf %0, %0 : vector<8x128xf32>
    %2 = arith.mulf %1, %0 : vector<8x128xf32>
    %cst = arith.constant 4.471500e-02 : f32
    %3 = vector.broadcast %cst : f32 to vector<8x128xf32>
    %4 = arith.mulf %3, %2 : vector<8x128xf32>
    %5 = arith.addf %0, %4 : vector<8x128xf32>
    %cst_1 = arith.constant 1.59576917 : f32
    %6 = vector.broadcast %cst_1 : f32 to vector<8x128xf32>
    %7 = arith.mulf %6, %5 : vector<8x128xf32>
    %8 = arith.negf %7 : vector<8x128xf32>
    %9 = math.exp %8 : vector<8x128xf32>
    %cst_2 = arith.constant 1.000000e+00 : f32
    %10 = vector.broadcast %cst_2 : f32 to vector<8x128xf32>
    %11 = arith.addf %10, %9 : vector<8x128xf32>
    %12 = arith.divf %10, %11 : vector<8x128xf32>
    %13 = arith.mulf %0, %12 : vector<8x128xf32>
    %c0_3 = arith.constant 0 : index
    %c0_4 = arith.constant 0 : index
    %14 = vector.load %arg2[%c0_3, %c0_4] : memref<8x128xf32, #tpu.memory_space<vmem>>, vector<8x128xf32>
    tpu.vector_store %arg2[%c0_3, %c0_4], %13 {strides = array<i32>} : memref<8x128xf32, #tpu.memory_space<vmem>>, vector<8x128xf32>,
    return
  }
  func.func @transform_0(%arg0: i32) -> (i32, i32) {
    %c0_i32 = arith.constant 0 : i32
    %c0_i32_0 = arith.constant 0 : i32
    return %arg0, %c0_i32 : i32, i32
  }
  func.func @transform_1(%arg0: i32) -> (i32, i32) {
    %c0_i32 = arith.constant 0 : i32
    %c0_i32_0 = arith.constant 0 : i32
    return %arg0, %c0_i32 : i32, i32
  }
}

</mosaic_0001>

<bundles_post_ra>
// kernel: tpu_custom_call.1
= control target key start
LH: loop header
LB: loop body
LE: loop exit
PB: predicated region body
PF: predicated region fallthrough
CT: control target
= control target key end

     0   :  { %6 = vsyncpa [#allocation3], 0  ;;  %s141_s0 = inlined_call_operand.hbm [shape: f32[8,128], index: 0, kind: input, shape index: {}]   ;;  %s142_s1 = inlined_call_operand.hbm [shape: f32[8,128], index: 1, kind: output, shape index: {}]  }
   0x1   :  { %7 = vsyncpa [#allocation4], 0  ;;  %s105_s6 = smov [#allocation2]   ;;  %s57_s10 = scalar_lea.hbm %s141_s0, 128 }
   0x2   :  { %s14_s7 = sshll.u32 %s105_s6, 4  ;;  %p58_p0 = scmp.ne.s32.totalorder %s141_s0, %s57_s10  ;;  %s15_s7 = int_to_ptr.vmem [resolvable:$true] %s14_s7 }
   0x3   :  { %p61_p1 = scmp.lt.u32.totalorder %s57_s10, %s141_s0 }
   0x5   :  { %p63_p2 = pnand %p61_p1, %p58_p0 }
   0x7   :  { %66 = shalt.err (!%p63_p2)
}
   0x8   :  { %s67_s15 = scalar_lea.vmem %s15_s7, 128  ;;  %p72_p4 = scmp.lt.s32.totalorder %s15_s7, %s15_s7 }
   0x9   :  { %p68_p3 = scmp.ne.s32.totalorder %s15_s7, %s67_s15  ;;  %p73_p5 = scmp.lt.s32.totalorder %s67_s15, %s67_s15 }
   0xb   :  { %p74_p6 = por %p73_p5, %p72_p4 }
   0xd   :  { %p75_p7 = pnand %p74_p6, %p68_p3 }
   0xf   :  { %78 = shalt.err (!%p75_p7)
}
  0x10   :  { %17 = dma.hbm_to_vmem [thread:$0]  %s141_s0, 128, %s15_s7, [#allocation3]  }
  0x11   :  { %101 = dma.done.wait [#allocation3], 128  }
  0x12   :  { %102 = vsyncadd [#allocation3], 4294967168  ;;  %v21_v0 = vld [vmem:[#allocation2] sm:$0xff]  ;;  %s106_s18 = smov [#allocation5]  }
  0x13   :  { %v22_v1 = vmul.f32 %v21_v0, %v21_v0  ;;  %s41_s19 = sshll.u32 %s106_s18, 4  ;;  %s42_s19 = int_to_ptr.vmem [resolvable:$true] %s41_s19 }
  0x14   :  { %s79_s0 = scalar_lea.vmem %s42_s19, 128  ;;  %p84_p9 = scmp.lt.s32.totalorder %s42_s19, %s42_s19 }
  0x15   :  { %v23_v2 = vmul.f32 %v22_v1, %v21_v0  ;;  %p80_p8 = scmp.ne.s32.totalorder %s42_s19, %s79_s0  ;;  %p85_p10 = scmp.lt.s32.totalorder %s79_s0, %s79_s0 }
  0x17   :  { %v24_v3 = vmul.f32 0.044715, %v23_v2  ;;  %p86_p11 = por %p85_p10, %p84_p9 }
  0x19   :  { %v25_v4 = vadd.f32 %v24_v3, %v21_v0  ;;  %p87_p12 = pnand %p86_p11, %p80_p8 }
  0x1b   :  { %v50_v5 = vmul.f32 -1.5957692, %v25_v4 }
  0x1d   :  { %v28_v6 = vmul.f32 1.442695, %v50_v5 }
  0x1f   :  { %53 = vpow2.f32 %v28_v6 }
  0x29   :  { %v54_v7 = vpop.eup %53 }
  0x2a   :  { %v30_v8 = vadd.f32 1.0, %v54_v7 }
  0x2c   :  { %55 = vrcp.f32 %v30_v8 }
  0x36   :  { %v56_v9 = vpop.eup %55 }
  0x37   :  { %v33_v10 = vmul.f32 %v56_v9, %v21_v0 }
  0x39   :  { %34 = vst [vmem:[#allocation5] sm:$0xff] %v33_v10 }
  0x3a   :  { %90 = shalt.err (!%p87_p12)
}
  0x3b   :  { %s91_s22 = scalar_lea.hbm %s142_s1, 128 }
  0x3c   :  { %p92_p13 = scmp.ne.s32.totalorder %s142_s1, %s91_s22  ;;  %p95_p0 = scmp.lt.u32.totalorder %s91_s22, %s142_s1 }
  0x3e   :  { %p97_p1 = pnand %p95_p0, %p92_p13 }
  0x40   :  { %100 = shalt.err (!%p97_p1)
}
  0x41   :  { %44 = dma.vmem_to_hbm [thread:$0]  %s42_s19, 128, %s142_s1, [#allocation4]  }
  0x42   :  { %103 = dma.done.wait [#allocation4], 128  }
  0x43   :  { %104 = vsyncadd [#allocation4], 4294967168 }
  0x44   :  { %48 = vsyncpa [#allocation3], 1 }
  0x45   :  { %49 = vsyncpa [#allocation4], 1 }

</bundles_post_ra>
